<compile_context>
chip_gen: v7x
topology: tpu7x:2x2x1
jax: 0.10.0
libtpu: 0.0.40
codegen_flags: <defaults>
</compile_context>

<pallas_src>
import jax
import jax.numpy as jnp
from jax.experimental import pallas as pl
from jax.experimental.pallas import tpu as pltpu


# --------------------------------------------------------------------------
# Kernel
# --------------------------------------------------------------------------
def mlp_r2_kernel(x_ref,
                  w1_ref, b1_ref,
                  w2_ref, b2_ref,
                  w3_ref, b3_ref,
                  w4_ref, b4_ref,
                  w5_ref, b5_ref,
                  out_ref):
    # x and all weights arrive as bf16; accumulation + elementwise math in f32.
    x = x_ref[...]

    # fc1_2 + ReLU
    h = jnp.dot(x, w1_ref[...], preferred_element_type=jnp.float32) + b1_ref[...]
    h = jnp.maximum(h, 0.0)

    # folded (fc2_3_i + fc2_3_ii) + ReLU  -> single matmul
    h = jnp.dot(h.astype(jnp.bfloat16), w2_ref[...],
                preferred_element_type=jnp.float32) + b2_ref[...]
    h = jnp.maximum(h, 0.0)

    # folded (fc3_4_i + fc3_4_ii) + ReLU  -> single matmul
    h = jnp.dot(h.astype(jnp.bfloat16), w3_ref[...],
                preferred_element_type=jnp.float32) + b3_ref[...]
    h = jnp.maximum(h, 0.0)

    # fc4_5 + ReLU
    h = jnp.dot(h.astype(jnp.bfloat16), w4_ref[...],
                preferred_element_type=jnp.float32) + b4_ref[...]
    h = jnp.maximum(h, 0.0)

    # fc5_6
    logits = jnp.dot(h.astype(jnp.bfloat16), w5_ref[...],
                     preferred_element_type=jnp.float32) + b5_ref[...]

    # log_softmax over dim=1 (lane axis), numerically stable, all f32.
    m = jnp.max(logits, axis=1, keepdims=True)
    shifted = logits - m
    lse = jnp.log(jnp.sum(jnp.exp(shifted), axis=1, keepdims=True))
    out_ref[...] = shifted - lse


# --------------------------------------------------------------------------
# One-time parameter preparation (hoisted out of the per-call path)
# --------------------------------------------------------------------------
def prepare_params(params):
    """Transform PyTorch-layout params once:
       - fold the two-branch layers (W = Wi + Wii, b = bi + bii)
       - transpose weights [out, in] -> [in, out] and cast to bf16 (MXU operands)
       - biases stay f32, shaped [1, out]."""
    def wb(name):
        w = params[f"{name}.weight"].T.astype(jnp.bfloat16)
        b = params[f"{name}.bias"][None, :].astype(jnp.float32)
        return w, b

    w1, b1 = wb("fc1_2")
    w2 = (params["fc2_3_i.weight"] + params["fc2_3_ii.weight"]).T.astype(jnp.bfloat16)
    b2 = (params["fc2_3_i.bias"] + params["fc2_3_ii.bias"])[None, :].astype(jnp.float32)
    w3 = (params["fc3_4_i.weight"] + params["fc3_4_ii.weight"]).T.astype(jnp.bfloat16)
    b3 = (params["fc3_4_i.bias"] + params["fc3_4_ii.bias"])[None, :].astype(jnp.float32)
    w4, b4 = wb("fc4_5")
    w5, b5 = wb("fc5_6")
    return (w1, b1, w2, b2, w3, b3, w4, b4, w5, b5)


def _pick_batch_tile(batch):
    # Big tiles amortize the ~0.35 us per-grid-step overhead; VMEM never binds
    # for these shapes (weights ~30 KB, a 4096x32 bf16 x-tile is 256 KB).
    for tb in (4096, 2048, 1024, 512):
        if batch >= tb and batch % tb == 0:
            return tb
    return batch  # tiny / odd batch: single grid step over the full array


# --------------------------------------------------------------------------
# Wrapper
# --------------------------------------------------------------------------
def mlp_r2_forward(x, prepared, *, batch_tile=None):
    """x: [batch, input_size] f32 (cast to bf16 on the way in).
       prepared: output of prepare_params()."""
    w1, b1, w2, b2, w3, b3, w4, b4, w5, b5 = prepared
    batch, in_dim = x.shape
    out_dim = w5.shape[1]

    tb = batch_tile if batch_tile is not None else _pick_batch_tile(batch)
    assert batch % tb == 0, "batch must be divisible by the batch tile"
    grid = (batch // tb,)

    x = x.astype(jnp.bfloat16)
    weight_args = (w1, b1, w2, b2, w3, b3, w4, b4, w5, b5)

    def const_spec(a):  # weights/biases: resident, same block every grid step
        return pl.BlockSpec(a.shape, lambda i: (0, 0))

    in_specs = ([pl.BlockSpec((tb, in_dim), lambda i: (i, 0))]
                + [const_spec(a) for a in weight_args])
    out_specs = pl.BlockSpec((tb, out_dim), lambda i: (i, 0))

    return pl.pallas_call(
        mlp_r2_kernel,
        out_shape=jax.ShapeDtypeStruct((batch, out_dim), jnp.float32),
        grid=grid,
        in_specs=in_specs,
        out_specs=out_specs,
        compiler_params=pltpu.CompilerParams(
            dimension_semantics=("parallel",)),
    )(x, *weight_args)


# --------------------------------------------------------------------------
# Deterministic init + references
# --------------------------------------------------------------------------
def init_params(key, input_size, output_size, hidden_sizes):
    """PyTorch-default-style init: U(-1/sqrt(fan_in), 1/sqrt(fan_in))."""
    layer_dims = {
        "fc1_2":    (input_size, hidden_sizes[0]),
        "fc2_3_i":  (hidden_sizes[0], hidden_sizes[1]),
        "fc2_3_ii": (hidden_sizes[0], hidden_sizes[1]),
        "fc3_4_i":  (hidden_sizes[1], hidden_sizes[2]),
        "fc3_4_ii": (hidden_sizes[1], hidden_sizes[2]),
        "fc4_5":    (hidden_sizes[2], hidden_sizes[3]),
        "fc5_6":    (hidden_sizes[3], output_size),
    }
    params = {}
    for name, (fan_in, fan_out) in layer_dims.items():
        key, kw, kb = jax.random.split(key, 3)
        bound = 1.0 / jnp.sqrt(jnp.float32(fan_in))
        params[f"{name}.weight"] = jax.random.uniform(
            kw, (fan_out, fan_in), jnp.float32, -bound, bound)
        params[f"{name}.bias"] = jax.random.uniform(
            kb, (fan_out,), jnp.float32, -bound, bound)
    return params


def reference_forward_f32(x, params):
    """Pure-JAX f32 reference matching the PyTorch forward exactly."""
    def lin(h, name):
        return h @ params[f"{name}.weight"].T + params[f"{name}.bias"]
    h = jax.nn.relu(lin(x, "fc1_2"))
    h = jax.nn.relu(lin(h, "fc2_3_i") + lin(h, "fc2_3_ii"))
    h = jax.nn.relu(lin(h, "fc3_4_i") + lin(h, "fc3_4_ii"))
    h = jax.nn.relu(lin(h, "fc4_5"))
    out = lin(h, "fc5_6")
    return jax.nn.log_softmax(out, axis=1)


def reference_forward_kernel_numerics(x, prepared):
    """Pure-JAX reference mimicking the kernel's folded / bf16-operand math."""
    w1, b1, w2, b2, w3, b3, w4, b4, w5, b5 = prepared
    def lin(h, w, b):
        return jnp.dot(h.astype(jnp.bfloat16), w,
                       preferred_element_type=jnp.float32) + b
    h = jax.nn.relu(lin(x, w1, b1))
    h = jax.nn.relu(lin(h, w2, b2))
    h = jax.nn.relu(lin(h, w3, b3))
    h = jax.nn.relu(lin(h, w4, b4))
    out = lin(h, w5, b5)
    return jax.nn.log_softmax(out, axis=1)


# --------------------------------------------------------------------------
if __name__ == "__main__":
    input_size = 32
    output_size = 16
    hidden_sizes = (64, 48, 32, 32)
    batch = 8

    key = jax.random.PRNGKey(0)
    key, kx = jax.random.split(key)
    x = jax.random.normal(kx, (batch, input_size), jnp.float32)
    params = init_params(key, input_size, output_size, hidden_sizes)

    prepared = prepare_params(params)          # one-time layout/fold/cast
    fwd = jax.jit(mlp_r2_forward)

    out = jax.block_until_ready(fwd(x, prepared))
    assert out.shape == (batch, output_size)

    # Tight check vs. a reference that uses the same folded/bf16 numerics.
    ref_kn = reference_forward_kernel_numerics(x, prepared)
    assert jnp.allclose(out, ref_kn, atol=2e-3, rtol=2e-3)

    # Semantic check vs. the exact f32 PyTorch-style forward (bf16 operand
    # rounding makes this approximate, not bit-exact).
    ref_f32 = reference_forward_f32(x, params)
    assert jnp.allclose(out, ref_f32, atol=1e-1, rtol=5e-2)

    print("KERNEL_OK")
</pallas_src>

<mosaic_0001>
module attributes {stable_mosaic.version = 11 : i64} {
  func.func @mlp_r2_kernel(%arg0: i32, %arg1: memref<8x32xbf16, #tpu.memory_space<vmem>>, %arg2: memref<32x64xbf16, #tpu.memory_space<vmem>>, %arg3: memref<1x64xf32, #tpu.memory_space<vmem>>, %arg4: memref<64x48xbf16, #tpu.memory_space<vmem>>, %arg5: memref<1x48xf32, #tpu.memory_space<vmem>>, %arg6: memref<48x32xbf16, #tpu.memory_space<vmem>>, %arg7: memref<1x32xf32, #tpu.memory_space<vmem>>, %arg8: memref<32x32xbf16, #tpu.memory_space<vmem>>, %arg9: memref<1x32xf32, #tpu.memory_space<vmem>>, %arg10: memref<32x16xbf16, #tpu.memory_space<vmem>>, %arg11: memref<1x16xf32, #tpu.memory_space<vmem>>, %arg12: memref<8x16xf32, #tpu.memory_space<vmem>>) attributes {dimension_semantics = [#tpu.dimension_semantics<parallel>], iteration_bounds = array<i64: 1>, scalar_prefetch = 0 : i64, scratch_operands = 0 : i64, tpu.core_type = #tpu.core_type<tc>, window_params = [{transform_indices = @transform_0, window_bounds = array<i64: 8, 32>}, {pipeline_mode = #tpu.pipeline_mode<synchronous>, transform_indices = @transform_1, window_bounds = array<i64: 32, 64>}, {pipeline_mode = #tpu.pipeline_mode<synchronous>, transform_indices = @transform_2, window_bounds = array<i64: 1, 64>}, {pipeline_mode = #tpu.pipeline_mode<synchronous>, transform_indices = @transform_3, window_bounds = array<i64: 64, 48>}, {pipeline_mode = #tpu.pipeline_mode<synchronous>, transform_indices = @transform_4, window_bounds = array<i64: 1, 48>}, {pipeline_mode = #tpu.pipeline_mode<synchronous>, transform_indices = @transform_5, window_bounds = array<i64: 48, 32>}, {pipeline_mode = #tpu.pipeline_mode<synchronous>, transform_indices = @transform_6, window_bounds = array<i64: 1, 32>}, {pipeline_mode = #tpu.pipeline_mode<synchronous>, transform_indices = @transform_7, window_bounds = array<i64: 32, 32>}, {pipeline_mode = #tpu.pipeline_mode<synchronous>, transform_indices = @transform_8, window_bounds = array<i64: 1, 32>}, {pipeline_mode = #tpu.pipeline_mode<synchronous>, transform_indices = @transform_9, window_bounds = array<i64: 32, 16>}, {pipeline_mode = #tpu.pipeline_mode<synchronous>, transform_indices = @transform_10, window_bounds = array<i64: 1, 16>}, {transform_indices = @transform_11, window_bounds = array<i64: 8, 16>}]} {
    %c0 = arith.constant 0 : index
    %c0_0 = arith.constant 0 : index
    %0 = vector.load %arg1[%c0, %c0_0] : memref<8x32xbf16, #tpu.memory_space<vmem>>, vector<8x32xbf16>
    %c0_1 = arith.constant 0 : index
    %c0_2 = arith.constant 0 : index
    %1 = vector.load %arg2[%c0_1, %c0_2] : memref<32x64xbf16, #tpu.memory_space<vmem>>, vector<32x64xbf16>
    %cst = arith.constant dense<0.000000e+00> : vector<8x64xf32>
    %2 = tpu.matmul %0, %1, %cst {dimension_numbers = #tpu.dot_dimension_numbers<[1], [0], [0], [1], [0, 0, 1, 1], [], []>} : vector<8x32xbf16>, vector<32x64xbf16>, vector<8x64xf32> -> vector<8x64xf32>
    %c0_3 = arith.constant 0 : index
    %c0_4 = arith.constant 0 : index
    %3 = vector.load %arg3[%c0_3, %c0_4] : memref<1x64xf32, #tpu.memory_space<vmem>>, vector<1x64xf32>
    %4 = vector.broadcast %3 : vector<1x64xf32> to vector<8x64xf32>
    %5 = arith.addf %2, %4 : vector<8x64xf32>
    %cst_5 = arith.constant 0.000000e+00 : f32
    %6 = vector.broadcast %cst_5 : f32 to vector<8x64xf32>
    %7 = arith.maximumf %5, %6 : vector<8x64xf32>
    %8 = arith.truncf %7 : vector<8x64xf32> to vector<8x64xbf16>
    %c0_6 = arith.constant 0 : index
    %c0_7 = arith.constant 0 : index
    %9 = vector.load %arg4[%c0_6, %c0_7] : memref<64x48xbf16, #tpu.memory_space<vmem>>, vector<64x48xbf16>
    %cst_8 = arith.constant dense<0.000000e+00> : vector<8x48xf32>
    %10 = tpu.matmul %8, %9, %cst_8 {dimension_numbers = #tpu.dot_dimension_numbers<[1], [0], [0], [1], [0, 0, 1, 1], [], []>} : vector<8x64xbf16>, vector<64x48xbf16>, vector<8x48xf32> -> vector<8x48xf32>
    %c0_9 = arith.constant 0 : index
    %c0_10 = arith.constant 0 : index
    %11 = vector.load %arg5[%c0_9, %c0_10] : memref<1x48xf32, #tpu.memory_space<vmem>>, vector<1x48xf32>
    %12 = vector.broadcast %11 : vector<1x48xf32> to vector<8x48xf32>
    %13 = arith.addf %10, %12 : vector<8x48xf32>
    %cst_11 = arith.constant 0.000000e+00 : f32
    %14 = vector.broadcast %cst_11 : f32 to vector<8x48xf32>
    %15 = arith.maximumf %13, %14 : vector<8x48xf32>
    %16 = arith.truncf %15 : vector<8x48xf32> to vector<8x48xbf16>
    %c0_12 = arith.constant 0 : index
    %c0_13 = arith.constant 0 : index
    %17 = vector.load %arg6[%c0_12, %c0_13] : memref<48x32xbf16, #tpu.memory_space<vmem>>, vector<48x32xbf16>
    %cst_14 = arith.constant dense<0.000000e+00> : vector<8x32xf32>
    %18 = tpu.matmul %16, %17, %cst_14 {dimension_numbers = #tpu.dot_dimension_numbers<[1], [0], [0], [1], [0, 0, 1, 1], [], []>} : vector<8x48xbf16>, vector<48x32xbf16>, vector<8x32xf32> -> vector<8x32xf32>
    %c0_15 = arith.constant 0 : index
    %c0_16 = arith.constant 0 : index
    %19 = vector.load %arg7[%c0_15, %c0_16] : memref<1x32xf32, #tpu.memory_space<vmem>>, vector<1x32xf32>
    %20 = vector.broadcast %19 : vector<1x32xf32> to vector<8x32xf32>
    %21 = arith.addf %18, %20 : vector<8x32xf32>
    %cst_17 = arith.constant 0.000000e+00 : f32
    %22 = vector.broadcast %cst_17 : f32 to vector<8x32xf32>
    %23 = arith.maximumf %21, %22 : vector<8x32xf32>
    %24 = arith.truncf %23 : vector<8x32xf32> to vector<8x32xbf16>
    %c0_18 = arith.constant 0 : index
    %c0_19 = arith.constant 0 : index
    %25 = vector.load %arg8[%c0_18, %c0_19] : memref<32x32xbf16, #tpu.memory_space<vmem>>, vector<32x32xbf16>
    %cst_20 = arith.constant dense<0.000000e+00> : vector<8x32xf32>
    %26 = tpu.matmul %24, %25, %cst_20 {dimension_numbers = #tpu.dot_dimension_numbers<[1], [0], [0], [1], [0, 0, 1, 1], [], []>} : vector<8x32xbf16>, vector<32x32xbf16>, vector<8x32xf32> -> vector<8x32xf32>
    %c0_21 = arith.constant 0 : index
    %c0_22 = arith.constant 0 : index
    %27 = vector.load %arg9[%c0_21, %c0_22] : memref<1x32xf32, #tpu.memory_space<vmem>>, vector<1x32xf32>
    %28 = vector.broadcast %27 : vector<1x32xf32> to vector<8x32xf32>
    %29 = arith.addf %26, %28 : vector<8x32xf32>
    %cst_23 = arith.constant 0.000000e+00 : f32
    %30 = vector.broadcast %cst_23 : f32 to vector<8x32xf32>
    %31 = arith.maximumf %29, %30 : vector<8x32xf32>
    %32 = arith.truncf %31 : vector<8x32xf32> to vector<8x32xbf16>
    %c0_24 = arith.constant 0 : index
    %c0_25 = arith.constant 0 : index
    %33 = vector.load %arg10[%c0_24, %c0_25] : memref<32x16xbf16, #tpu.memory_space<vmem>>, vector<32x16xbf16>
    %cst_26 = arith.constant dense<0.000000e+00> : vector<8x16xf32>
    %34 = tpu.matmul %32, %33, %cst_26 {dimension_numbers = #tpu.dot_dimension_numbers<[1], [0], [0], [1], [0, 0, 1, 1], [], []>} : vector<8x32xbf16>, vector<32x16xbf16>, vector<8x16xf32> -> vector<8x16xf32>
    %c0_27 = arith.constant 0 : index
    %c0_28 = arith.constant 0 : index
    %35 = vector.load %arg11[%c0_27, %c0_28] : memref<1x16xf32, #tpu.memory_space<vmem>>, vector<1x16xf32>
    %36 = vector.broadcast %35 : vector<1x16xf32> to vector<8x16xf32>
    %37 = arith.addf %34, %36 : vector<8x16xf32>
    %cst_29 = arith.constant dense<0xFF800000> : vector<8xf32>
    %38 = vector.multi_reduction <maximumf>, %37, %cst_29 [1] : vector<8x16xf32> to vector<8xf32>
    %39 = vector.shape_cast %38 : vector<8xf32> to vector<8x1xf32>
    %40 = vector.broadcast %39 : vector<8x1xf32> to vector<8x16xf32>
    %41 = arith.subf %37, %40 : vector<8x16xf32>
    %42 = math.exp %41 : vector<8x16xf32>
    %cst_30 = arith.constant dense<0.000000e+00> : vector<8xf32>
    %43 = vector.multi_reduction <add>, %42, %cst_30 [1] : vector<8x16xf32> to vector<8xf32>
    %44 = vector.shape_cast %43 : vector<8xf32> to vector<8x1xf32>
    %45 = math.log %44 : vector<8x1xf32>
    %46 = vector.broadcast %45 : vector<8x1xf32> to vector<8x16xf32>
    %47 = arith.subf %41, %46 : vector<8x16xf32>
    %c0_31 = arith.constant 0 : index
    %c0_32 = arith.constant 0 : index
    %48 = vector.load %arg12[%c0_31, %c0_32] : memref<8x16xf32, #tpu.memory_space<vmem>>, vector<8x16xf32>
    tpu.vector_store %arg12[%c0_31, %c0_32], %47 {strides = array<i32>} : memref<8x16xf32, #tpu.memory_space<vmem>>, vector<8x16xf32>,
    return
  }
  func.func @transform_0(%arg0: i32) -> (i32, i32) {
    %c0_i32 = arith.constant 0 : i32
    %c0_i32_0 = arith.constant 0 : i32
    return %arg0, %c0_i32 : i32, i32
  }
  func.func @transform_1(%arg0: i32) -> (i32, i32) {
    %c0_i32 = arith.constant 0 : i32
    %c0_i32_0 = arith.constant 0 : i32
    %c0_i32_1 = arith.constant 0 : i32
    return %c0_i32, %c0_i32_0 : i32, i32
  }
  func.func @transform_2(%arg0: i32) -> (i32, i32) {
    %c0_i32 = arith.constant 0 : i32
    %c0_i32_0 = arith.constant 0 : i32
    %c0_i32_1 = arith.constant 0 : i32
    return %c0_i32, %c0_i32_0 : i32, i32
  }
  func.func @transform_3(%arg0: i32) -> (i32, i32) {
    %c0_i32 = arith.constant 0 : i32
    %c0_i32_0 = arith.constant 0 : i32
    %c0_i32_1 = arith.constant 0 : i32
    return %c0_i32, %c0_i32_0 : i32, i32
  }
  func.func @transform_4(%arg0: i32) -> (i32, i32) {
    %c0_i32 = arith.constant 0 : i32
    %c0_i32_0 = arith.constant 0 : i32
    %c0_i32_1 = arith.constant 0 : i32
    return %c0_i32, %c0_i32_0 : i32, i32
  }
  func.func @transform_5(%arg0: i32) -> (i32, i32) {
    %c0_i32 = arith.constant 0 : i32
    %c0_i32_0 = arith.constant 0 : i32
    %c0_i32_1 = arith.constant 0 : i32
    return %c0_i32, %c0_i32_0 : i32, i32
  }
  func.func @transform_6(%arg0: i32) -> (i32, i32) {
    %c0_i32 = arith.constant 0 : i32
    %c0_i32_0 = arith.constant 0 : i32
    %c0_i32_1 = arith.constant 0 : i32
    return %c0_i32, %c0_i32_0 : i32, i32
  }
  func.func @transform_7(%arg0: i32) -> (i32, i32) {
    %c0_i32 = arith.constant 0 : i32
    %c0_i32_0 = arith.constant 0 : i32
    %c0_i32_1 = arith.constant 0 : i32
    return %c0_i32, %c0_i32_0 : i32, i32
  }
  func.func @transform_8(%arg0: i32) -> (i32, i32) {
    %c0_i32 = arith.constant 0 : i32
    %c0_i32_0 = arith.constant 0 : i32
    %c0_i32_1 = arith.constant 0 : i32
    return %c0_i32, %c0_i32_0 : i32, i32
  }
  func.func @transform_9(%arg0: i32) -> (i32, i32) {
    %c0_i32 = arith.constant 0 : i32
    %c0_i32_0 = arith.constant 0 : i32
    %c0_i32_1 = arith.constant 0 : i32
    return %c0_i32, %c0_i32_0 : i32, i32
  }
  func.func @transform_10(%arg0: i32) -> (i32, i32) {
    %c0_i32 = arith.constant 0 : i32
    %c0_i32_0 = arith.constant 0 : i32
    %c0_i32_1 = arith.constant 0 : i32
    return %c0_i32, %c0_i32_0 : i32, i32
  }
  func.func @transform_11(%arg0: i32) -> (i32, i32) {
    %c0_i32 = arith.constant 0 : i32
    %c0_i32_0 = arith.constant 0 : i32
    return %arg0, %c0_i32 : i32, i32
  }
}

</mosaic_0001>

<bundles_post_ra>
// kernel: mlp_r2_forward.1
= control target key start
LH: loop header
LB: loop body
LE: loop exit
PB: predicated region body
PF: predicated region fallthrough
CT: control target
= control target key end

     0   :  { %v565_v1 = vmov 0.0   ;;  %vm566_vm0 = vmmov 0   ;;  %vm64_vm1 = vcmask 261120   ;;  %s726_s0 = inlined_call_operand.vmem [shape: bf16[8,32], index: 0, kind: input, shape index: {}]   ;;  %s727_s1 = inlined_call_operand.vmem [shape: bf16[32,64], index: 1, kind: input, shape index: {}]   ;;  %s728_s2 = inlined_call_operand.vmem [shape: f32[1,64], index: 2, kind: input, shape index: {}]   ;;  %s729_s3 = inlined_call_operand.vmem [shape: bf16[64,48], index: 3, kind: input, shape index: {}]   ;;  %s730_s4 = inlined_call_operand.vmem [shape: f32[1,48], index: 4, kind: input, shape index: {}]   ;;  %s731_s5 = inlined_call_operand.vmem [shape: bf16[48,32], index: 5, kind: input, shape index: {}]   ;;  %s732_s6 = inlined_call_operand.vmem [shape: f32[1,32], index: 6, kind: input, shape index: {}]   ;;  %s733_s7 = inlined_call_operand.vmem [shape: bf16[32,32], index: 7, kind: input, shape index: {}]   ;;  %s734_s8 = inlined_call_operand.vmem [shape: f32[1,32], index: 8, kind: input, shape index: {}]   ;;  %s735_s9 = inlined_call_operand.vmem [shape: bf16[32,16], index: 9, kind: input, shape index: {}]   ;;  %s736_s10 = inlined_call_operand.vmem [shape: f32[1,16], index: 10, kind: input, shape index: {}]   ;;  %s737_s11 = inlined_call_operand.hbm [shape: f32[8,16], index: 11, kind: output, shape index: {}]  }
   0x1   :  { %v524_v0 = vld [vmem:[%s727_s1] sm:$0xff]   ;;  %475 = vmatprep.subr.bf16.mxu0 %v565_v1  ;;  %483 = vmatprep.subr.bf16.mxu1 %v565_v1  ;;  %v525_v2 = vld [vmem:[%s727_s1 + $0x8] sm:$0xff]  }
   0x2   :  { %476 = vmatpush3.bf16.msra.mxu0 %v524_v0  ;;  %479 = vmatprep.mubr.msk.bf16.mxu0 %vm566_vm0, %v565_v1  ;;  %v526_v3 = vld [vmem:[%s729_s3] sm:$0xff]   ;;  %v527_v5 = vld [vmem:[%s729_s3 + $0x8] sm:$0xff]  }
   0x3   :  { %477 = vmatprep.subr.bf16.mxu0 %v565_v1  ;;  %491 = vmatprep.mubr.msk.bf16.mxu1 %vm566_vm0, %v565_v1  ;;  %v40_v4 = vld [vmem:[%s726_s0] sm:$0xf] }
   0x4   :  { %484 = vmatpush3.bf16.msra.mxu1 %v526_v3 }
   0x5   :  { %485 = vmatprep.subr.bf16.mxu1 %v565_v1 }
   0x6   :  { %478 = vmatpush3.bf16.msra.mxu0 %v525_v2 }
   0x7   :  { %495 = vmatprep.subr.bf16.mxu0 %v565_v1 }
   0x8   :  { %486 = vmatpush3.bf16.msra.mxu1 %v527_v5 }
   0x9   :  { %480 = vmatmul.mubr.msk.bf16.vlgmr.msra.gmra.mrb[0].mxu0 %vm64_vm1, %v40_v4  ;;  %487 = vmatprep.subr.bf16.mxu1 %v565_v1 }
   0xa   :  { %501 = vmatprep.mubr.msk.bf16.mxu0 %vm566_vm0, %v565_v1 }
   0xb   :  { %16 = vsyncpa [#allocation3], 0  ;;  %v528_v6 = vld [vmem:[%s729_s3 + $0x10] sm:$0xff]   ;;  %v529_v7 = vld [vmem:[%s729_s3 + $0x18] sm:$0xff]   ;;  %vm149_vm2 = vcmask 523264   ;;  %vm226_vm3 = vcmask 392192  }
   0xc   :  { %488 = vmatpush3.bf16.msra.mxu1 %v528_v6  ;;  %v530_v8 = vld [vmem:[%s731_s5] sm:$0xff]   ;;  %v531_v17 = vld [vmem:[%s731_s5 + $0x8] sm:$0xff]   ;;  %v532_v18 = vld [vmem:[%s731_s5 + $0x10] sm:$0xff]   ;;  %vm406_vm4 = vcmask 130048  }
   0xd   :  { %489 = vmatprep.subr.bf16.mxu1 %v565_v1  ;;  %496 = vmatpush3.bf16.msra.mxu0 %v530_v8  ;;  %v434_v9 = vld [vmem:[%s728_s2] ss:$0 sm:$0xff]  ;;  %v534_v28 = vld [vmem:[%s733_s7 + $0x8] sm:$0xff]  }
   0xe   :  { %497 = vmatprep.subr.bf16.mxu0 %v565_v1  ;;  %v533_v19 = vld [vmem:[%s733_s7] sm:$0xff]   ;;  %v536_v38 = vld [vmem:[%s735_s9 + $0x8] sm:$0xff]  }
   0xf   :  { %v438_v20 = vld [vmem:[%s730_s4] ss:$0 sm:$0xff] }
  0x10   :  { %490 = vmatpush3.bf16.msra.mxu1 %v529_v7  ;;  %v535_v29 = vld [vmem:[%s735_s9] sm:$0xff]  }
  0x11   :  { %505 = vmatprep.subr.bf16.mxu1 %v565_v1  ;;  %498 = vmatpush3.bf16.msra.mxu0 %v531_v17  ;;  %v444_v30 = vld [vmem:[%s732_s6] ss:$0 sm:$0xff] }
  0x12   :  { %499 = vmatprep.subr.bf16.mxu0 %v565_v1  ;;  %v449_v39 = vld [vmem:[%s734_s8] ss:$0 sm:$0xff]  ;;  %s567_s8 = smov [#allocation2]  }
  0x13   :  { %v453_v47 = vld [vmem:[%s736_s10] ss:$0 sm:$0xff]  ;;  %s426_s9 = sshll.u32 %s567_s8, 4  ;;  %s427_s9 = int_to_ptr.vmem [resolvable:$true] %s426_s9 }
  0x14   :  { %s541_s10 = scalar_lea.vmem %s427_s9, 128  ;;  %p546_p1 = scmp.lt.s32.totalorder %s427_s9, %s427_s9 }
  0x15   :  { %500 = vmatpush3.bf16.msra.mxu0 %v532_v18  ;;  %p542_p0 = scmp.ne.s32.totalorder %s427_s9, %s541_s10  ;;  %p547_p2 = scmp.lt.s32.totalorder %s541_s10, %s541_s10 }
  0x16   :  { %513 = vmatprep.subr.bf16.mxu0 %v565_v1 }
  0x17   :  { %p548_p3 = por %p547_p2, %p546_p1 }
  0x19   :  { %p549_p4 = pnand %p548_p3, %p542_p0 }
  0xdc   :  { %v102_v10 = vpop.f32.mrb[0].mxu0 }
  0xdd   :  { %v103_v11 = vadd.f32 %v434_v9, %v102_v10  ;;  %v481_v12 = vpop.f32.mrb[1].mxu0 }
  0xde   :  { %v105_v13 = vpop.f32.mrb[2].mxu0 }
  0xdf   :  { %v108_v14 = vmax.f32 %v103_v11, 0.0  ;;  %v482_v15 = vpop.f32.mrb[3].mxu0 }
  0xe1   :  { %v109_v16 = vpack.c.bf16 %v108_v14, %v108_v14 }
  0xe3   :  { %492 = vmatmul.mubr.msk.bf16.vlgmr.msra.gmra.mrb[0].mxu1 %vm149_vm2, %v109_v16 }
  0xe4   :  { %509 = vmatprep.mubr.msk.bf16.mxu1 %vm566_vm0, %v565_v1  ;;  %506 = vmatpush3.bf16.msra.mxu1 %v533_v19 }
  0xe5   :  { %507 = vmatprep.subr.bf16.mxu1 %v565_v1 }
  0xe8   :  { %508 = vmatpush3.bf16.msra.mxu1 %v534_v28 }
 0x1b6   :  { %v187_v21 = vpop.f32.mrb[0].mxu1 }
 0x1b7   :  { %v188_v22 = vadd.f32 %v438_v20, %v187_v21  ;;  %v493_v23 = vpop.f32.mrb[1].mxu1 }
 0x1b8   :  { %v190_v24 = vpop.f32.mrb[2].mxu1 }
 0x1b9   :  { %v193_v25 = vmax.f32 %v188_v22, 0.0  ;;  %v494_v26 = vpop.f32.mrb[3].mxu1 }
 0x1bb   :  { %v194_v27 = vpack.c.bf16 %v193_v25, %v193_v25 }
 0x1bd   :  { %502 = vmatmul.mubr.msk.bf16.vlgmr.msra.gmra.mrb[4].mxu0 %vm226_vm3, %v194_v27 }
 0x1be   :  { %517 = vmatprep.mubr.msk.bf16.mxu0 %vm566_vm0, %v565_v1  ;;  %514 = vmatpush3.bf16.msra.mxu0 %v535_v29 }
 0x1bf   :  { %515 = vmatprep.subr.bf16.mxu0 %v565_v1 }
 0x1c2   :  { %516 = vmatpush3.bf16.msra.mxu0 %v536_v38 }
 0x290   :  { %v264_v31 = vpop.f32.mrb[4].mxu0 }
 0x291   :  { %v265_v32 = vadd.f32 %v444_v30, %v264_v31  ;;  %v503_v33 = vpop.f32.mrb[5].mxu0 }
 0x292   :  { %v267_v34 = vpop.f32.mrb[6].mxu0 }
 0x293   :  { %v270_v35 = vmax.f32 %v265_v32, 0.0  ;;  %v504_v36 = vpop.f32.mrb[7].mxu0 }
 0x295   :  { %v271_v37 = vpack.c.bf16 %v270_v35, %v270_v35 }
 0x297   :  { %510 = vmatmul.mubr.msk.bf16.vlgmr.msra.gmra.mrb[4].mxu1 %vm64_vm1, %v271_v37 }
 0x36a   :  { %v332_v40 = vpop.f32.mrb[4].mxu1 }
 0x36b   :  { %v333_v41 = vadd.f32 %v449_v39, %v332_v40  ;;  %v511_v42 = vpop.f32.mrb[5].mxu1 }
 0x36c   :  { %v335_v43 = vpop.f32.mrb[6].mxu1 }
 0x36d   :  { %v338_v44 = vmax.f32 %v333_v41, 0.0  ;;  %v512_v45 = vpop.f32.mrb[7].mxu1 }
 0x36f   :  { %v339_v46 = vpack.c.bf16 %v338_v44, %v338_v44 }
 0x371   :  { %518 = vmatmul.mubr.msk.bf16.vlgmr.msra.gmra.mrb[8].mxu0 %vm64_vm1, %v339_v46 }
 0x444   :  { %v400_v48 = vpop.f32.mrb[8].mxu0 }
 0x445   :  { %v401_v49 = vadd.f32 %v453_v47, %v400_v48  ;;  %v519_v50 = vpop.f32.mrb[9].mxu0 }
 0x446   :  { %v403_v51 = vpop.f32.mrb[10].mxu0 }
 0x447   :  { %v520_v52 = vpop.f32.mrb[11].mxu0  ;;  %v407_v53 = vsel %vm406_vm4, %v401_v49, -inf }
 0x448   :  { %408 = vmax.xlane.f32.xlu0 %v407_v53 }
 0x4d5   :  { %v409_v54 = vpop.xlane.xlu0 %408 }
 0x4d6   :  { %v410_v55 = vsub.f32 %v401_v49, %v409_v54 }
 0x4d8   :  { %v411_v56 = vmul.f32 1.442695, %v410_v55 }
 0x4da   :  { %537 = vpow2.f32 %v411_v56 }
 0x4e4   :  { %v538_v57 = vpop.eup %537 }
 0x4e5   :  { %v413_v58 = vsel %vm406_vm4, %v538_v57, 0.0 }
 0x4e6   :  { %414 = vadd.xlane.f32.xlu0 %v413_v58 }
 0x573   :  { %v415_v59 = vpop.xlane.xlu0 %414 }
 0x574   :  { %539 = vlog2.f32 %v415_v59 }
 0x57e   :  { %v540_v60 = vpop.eup %539 }
 0x57f   :  { %v417_v61 = vmul.f32 0.6931472, %v540_v60 }
 0x581   :  { %v418_v62 = vsub.f32 %v410_v55, %v417_v61 }
 0x583   :  { %419 = vst.msk [vmem:[#allocation2] sm:$0xff] %vm406_vm4, %v418_v62 }
 0x584   :  { %552 = shalt.err (!%p549_p4)
}
 0x585   :  { %s553_s28 = scalar_lea.hbm %s737_s11, 128 }
 0x586   :  { %p554_p5 = scmp.ne.s32.totalorder %s737_s11, %s553_s28  ;;  %p557_p6 = scmp.lt.u32.totalorder %s553_s28, %s737_s11 }
 0x588   :  { %p559_p7 = pnand %p557_p6, %p554_p5 }
 0x58a   :  { %562 = shalt.err (!%p559_p7)
}
 0x58b   :  { %429 = dma.vmem_to_hbm [thread:$0]  %s427_s9, 128, %s737_s11, [#allocation3]  }
 0x58c   :  { %563 = dma.done.wait [#allocation3], 128  }
 0x58d   :  { %564 = vsyncadd [#allocation3], 4294967168 }
 0x58e   :  { %433 = vsyncpa [#allocation3], 1 }

</bundles_post_ra>
